<compile_context>
chip_gen: v6e
topology: v6e:2x2x1
jax: 0.10.0
libtpu: 0.0.40
codegen_flags: <defaults>
</compile_context>

<pallas_src>
import jax
import jax.numpy as jnp
import numpy as np
from jax.experimental import pallas as pl
from jax.experimental.pallas import tpu as pltpu

# Feature-column convention inside the packed `input` tensor.
DM_CAT = 0
DM_POS = 1
DM_SENSE = 2
# (column 3 = node index, unused by this module's forward)


def _round_up(x, m):
    return ((x + m - 1) // m) * m


# ----------------------------------------------------------------------------
# Pallas kernel:
#   out = relu( T_pos[pos] + T_cat[cat] + T_sense[sense] + head @ W_h + b )
# which is exactly relu( concat([pos_emb,cat_emb,sense_emb,head_emb]) @ W + b )
# with the LUTs algebraically folded into W.
# ----------------------------------------------------------------------------
def _make_root_kernel(head_resident):
    """head_resident=True : head_ref is the full (M_pad, enc) packed src_enc;
                            its rows are selected in-kernel from ids column 3.
       head_resident=False: head_ref is an already-gathered (tn, enc) row tile."""

    def kernel(ids_ref, t_pos_ref, t_cat_ref, t_sense_ref,
               head_ref, w_head_ref, b_ref, o_ref):
        tn = ids_ref.shape[0]

        def select(col, table_ref):
            # One-hot row selection on the MXU (exact; ids only compared).
            ids = ids_ref[:, col:col + 1]                                  # (tn, 1)
            iota = jax.lax.broadcasted_iota(jnp.int32,
                                            (tn, table_ref.shape[0]), 1)   # (tn, V)
            onehot = (iota == ids).astype(jnp.float32)
            return jnp.dot(onehot, table_ref[...],
                           preferred_element_type=jnp.float32)             # (tn, R/enc)

        acc = select(0, t_pos_ref)
        acc = acc + select(1, t_cat_ref)
        acc = acc + select(2, t_sense_ref)

        if head_resident:
            head_rows = select(3, head_ref)                                # (tn, enc)
        else:
            head_rows = head_ref[...].astype(jnp.float32)                  # (tn, enc)

        acc = acc + jnp.dot(head_rows, w_head_ref[...],
                            preferred_element_type=jnp.float32)
        acc = acc + b_ref[...]                                             # (1, R) broadcast
        o_ref[...] = jnp.maximum(acc, 0.0).astype(o_ref.dtype)

    return kernel


def root_encoder_fused(ids, t_pos, t_cat, t_sense, head, w_head, bias,
                       *, head_resident, tile_n=1024, out_dtype=jnp.float32):
    """Fused gather + Linear + ReLU, tiled over rows of the packed sequence."""
    N = ids.shape[0]
    enc, R = w_head.shape

    # Row tile: large (amortizes ~0.35 us per grid step) but split so the grid
    # has >= 2 steps when N allows it (both TensorCores busy on v7x).
    if N <= 8:
        tn = N
    else:
        tn = min(tile_n, _round_up((N + 1) // 2, 8))
    grid = (pl.cdiv(N, tn),)

    def row_spec(d):
        return pl.BlockSpec((tn, d), lambda i: (i, 0))

    def resident_spec(arr):
        # Grid-invariant block index -> stays resident in VMEM across tiles.
        return pl.BlockSpec(arr.shape, lambda i: (0, 0))

    head_spec = resident_spec(head) if head_resident else row_spec(enc)

    return pl.pallas_call(
        _make_root_kernel(head_resident),
        out_shape=jax.ShapeDtypeStruct((N, R), out_dtype),
        grid=grid,
        in_specs=[row_spec(ids.shape[1]),
                  resident_spec(t_pos), resident_spec(t_cat),
                  resident_spec(t_sense),
                  head_spec, resident_spec(w_head), resident_spec(bias)],
        out_specs=pl.BlockSpec((tn, R), lambda i: (i, 0)),
        compiler_params=pltpu.CompilerParams(
            dimension_semantics=("parallel",)),
    )(ids, t_pos, t_cat, t_sense, head, w_head, bias)


# ----------------------------------------------------------------------------
# One-time (load-time) parameter preparation: fold LUTs into the Linear weight.
# ----------------------------------------------------------------------------
def prepare_root_params(params):
    pos_lut = params["dm_target_pos_lut"].astype(jnp.float32)
    cat_lut = params["dm_cat_lut"].astype(jnp.float32)
    sense_lut = params["dm_sense_lut"].astype(jnp.float32)
    w = params["root_w"].astype(jnp.float32)      # (D, R), rows = [pos|cat|sense|head]
    b = params["root_b"].astype(jnp.float32)

    dp, dc, ds = pos_lut.shape[1], cat_lut.shape[1], sense_lut.shape[1]
    D, R = w.shape
    enc = D - dp - dc - ds
    assert enc > 0

    def fold(lut, w_rows):
        t = jnp.dot(lut, w_rows)                   # (V, R) f32
        v_pad = _round_up(t.shape[0], 8)
        if v_pad != t.shape[0]:                    # sublane-align with zero rows
            t = jnp.pad(t, ((0, v_pad - t.shape[0]), (0, 0)))  # (never selected)
        return t

    return {
        "t_pos":   fold(pos_lut,   w[:dp]),
        "t_cat":   fold(cat_lut,   w[dp:dp + dc]),
        "t_sense": fold(sense_lut, w[dp + dc:dp + dc + ds]),
        "w_head":  w[dp + dc + ds:],               # (enc, R)
        "bias":    b.reshape(1, R),
    }


# ----------------------------------------------------------------------------
# DMRootEncoder forward (inference)
# ----------------------------------------------------------------------------
def _flat_head_index(rel_index, src_enc_lengths):
    # getEmb: per-sentence gather from the packed src_enc.  lengths/rel_index
    # are static Python data, so the flat index is built at trace time.
    offsets = np.concatenate([[0], np.cumsum(np.asarray(src_enc_lengths))[:-1]])
    return np.concatenate(
        [np.asarray(idx) + off for idx, off in zip(rel_index, offsets)]
    ).astype(np.int32)


def dm_root_encoder_forward(prep, input_ids, lengths,
                            rel_index, src_enc_data, src_enc_lengths,
                            *, max_resident_src_bytes=4 << 20,
                            force_head_resident=None, out_dtype=jnp.float32):
    """
    prep            : output of prepare_root_params (load-time folded tables)
    input_ids       : (N, n_feature) int32 -- packed gold-AMR node features
    lengths         : list[int]            -- per-sentence gold-AMR lengths
    rel_index       : list[np.ndarray]     -- per-sentence mapping into the
                                              recategorized src_enc rows
    src_enc_data    : (M, root_src_enc_size) f32 -- packed weighted root_src_enc
    src_enc_lengths : list[int]            -- per-sentence re-AMR lengths
    returns (root_emb (N, rel_dim), lengths)  ~ MyPackedSequence
    """
    # TODO(synk): training-time alpha_dropout (data_dropout) and nn.Dropout are
    # identity at inference and are not implemented here.
    flat_index = _flat_head_index(rel_index, src_enc_lengths)

    ids = jnp.stack(
        [input_ids[:, DM_POS].astype(jnp.int32),
         input_ids[:, DM_CAT].astype(jnp.int32),
         input_ids[:, DM_SENSE].astype(jnp.int32),
         jnp.asarray(flat_index)],
        axis=1)                                                  # (N, 4)

    M, enc = src_enc_data.shape
    head_resident = (M * enc * 4 <= max_resident_src_bytes)
    if force_head_resident is not None:
        head_resident = force_head_resident

    if head_resident:
        # Keep the whole packed src_enc resident in VMEM; rows are selected
        # in-kernel -> the (N, enc) head_emb intermediate never touches HBM.
        M_pad = _round_up(M, 8)
        head = src_enc_data.astype(jnp.float32)
        if M_pad != M:
            head = jnp.pad(head, ((0, M_pad - M), (0, 0)))
    else:
        # Fallback for large src_enc: gather in the wrapper, stream row tiles.
        head = src_enc_data.astype(jnp.float32)[jnp.asarray(flat_index)]

    root_emb = root_encoder_fused(
        ids, prep["t_pos"], prep["t_cat"], prep["t_sense"],
        head, prep["w_head"], prep["bias"],
        head_resident=head_resident, out_dtype=out_dtype)
    return root_emb, lengths


# ----------------------------------------------------------------------------
# Deterministic parameter construction + example run
# ----------------------------------------------------------------------------
def make_params(key, n_pos, n_cat, n_sense,
                pos_dim, cat_dim, sense_dim, enc_size, rel_dim):
    ks = jax.random.split(key, 5)
    input_size = pos_dim + cat_dim + sense_dim + enc_size
    return {
        "dm_target_pos_lut": jax.random.normal(ks[0], (n_pos, pos_dim), jnp.float32) * 0.1,
        "dm_cat_lut": jax.random.normal(ks[1], (n_cat, cat_dim), jnp.float32) * 0.1,
        "dm_sense_lut": jax.random.normal(ks[2], (n_sense, sense_dim), jnp.float32) * 0.1,
        "root_w": jax.random.normal(ks[3], (input_size, rel_dim), jnp.float32)
                  * (1.0 / np.sqrt(input_size)),
        "root_b": jax.random.normal(ks[4], (rel_dim,), jnp.float32) * 0.01,
    }


if __name__ == "__main__":
    key = jax.random.PRNGKey(0)

    # Small, module-consistent shapes.
    n_pos, n_cat, n_sense = 16, 12, 10      # vocab sizes of the three LUTs
    pos_dim = cat_dim = sense_dim = 8       # embedding dims
    enc_size = 8                            # root_src_enc_size
    rel_dim = 32                            # opt.rel_dim
    lengths = [5, 3]                        # gold AMR lengths per sentence
    src_enc_lengths = [6, 3]                # recategorized AMR lengths
    N = sum(lengths)                        # packed gold len = 8
    M = sum(src_enc_lengths)                # packed re-AMR len = 9
    n_feature = 4

    params = make_params(key, n_pos, n_cat, n_sense,
                         pos_dim, cat_dim, sense_dim, enc_size, rel_dim)
    prep = prepare_root_params(params)      # one-time, load-time fold

    k1, k2, k3, k4 = jax.random.split(key, 4)
    # Packed node features: columns [DM_CAT, DM_POS, DM_SENSE, node_index].
    input_ids = jnp.stack(
        [
            jax.random.randint(k1, (N,), 0, n_cat),
            jax.random.randint(k2, (N,), 0, n_pos),
            jax.random.randint(k3, (N,), 0, n_sense),
            jnp.arange(N, dtype=jnp.int32),
        ],
        axis=1,
    ).astype(jnp.int32)
    assert input_ids.shape == (N, n_feature)

    # Packed weighted root_src_enc data.
    src_enc_data = jax.random.normal(k4, (M, enc_size), jnp.float32)

    # Per-sentence index mapping (values < re-AMR length of that sentence).
    rng = np.random.RandomState(0)
    rel_index = [rng.randint(0, l_re, size=l_gold)
                 for l_gold, l_re in zip(lengths, src_enc_lengths)]

    # Pure f32 reference of the module forward (dropout = identity).
    flat_index = _flat_head_index(rel_index, src_enc_lengths)
    pos_emb = params["dm_target_pos_lut"][input_ids[:, DM_POS]]
    cat_emb = params["dm_cat_lut"][input_ids[:, DM_CAT]]
    sense_emb = params["dm_sense_lut"][input_ids[:, DM_SENSE]]
    head_emb = src_enc_data[jnp.asarray(flat_index)]
    ref_in = jnp.concatenate([pos_emb, cat_emb, sense_emb, head_emb], axis=1)
    ref = jnp.maximum(jnp.dot(ref_in, params["root_w"]) + params["root_b"], 0.0)

    # Main path: src_enc resident in VMEM, all gathers fused into the kernel.
    root_emb, out_lengths = dm_root_encoder_forward(
        prep, input_ids, lengths, rel_index, src_enc_data, src_enc_lengths)
    root_emb = jax.block_until_ready(root_emb)
    assert root_emb.shape == (N, rel_dim)
    assert out_lengths == lengths
    np.testing.assert_allclose(np.asarray(root_emb), np.asarray(ref),
                               rtol=1e-4, atol=1e-4)

    # Fallback path (large-M gate): head rows gathered in the wrapper.
    root_emb_fb, _ = dm_root_encoder_forward(
        prep, input_ids, lengths, rel_index, src_enc_data, src_enc_lengths,
        force_head_resident=False)
    root_emb_fb = jax.block_until_ready(root_emb_fb)
    np.testing.assert_allclose(np.asarray(root_emb_fb), np.asarray(ref),
                               rtol=1e-4, atol=1e-4)

    print("KERNEL_OK")
</pallas_src>

<mosaic_0001>
module attributes {stable_mosaic.version = 11 : i64} {
  func.func @kernel(%arg0: i32, %arg1: memref<8x4xi32, #tpu.memory_space<vmem>>, %arg2: memref<16x32xf32, #tpu.memory_space<vmem>>, %arg3: memref<16x32xf32, #tpu.memory_space<vmem>>, %arg4: memref<16x32xf32, #tpu.memory_space<vmem>>, %arg5: memref<16x8xf32, #tpu.memory_space<vmem>>, %arg6: memref<8x32xf32, #tpu.memory_space<vmem>>, %arg7: memref<1x32xf32, #tpu.memory_space<vmem>>, %arg8: memref<8x32xf32, #tpu.memory_space<vmem>>) attributes {dimension_semantics = [#tpu.dimension_semantics<parallel>], iteration_bounds = array<i64: 1>, scalar_prefetch = 0 : i64, scratch_operands = 0 : i64, tpu.core_type = #tpu.core_type<tc>, window_params = [{transform_indices = @transform_0, window_bounds = array<i64: 8, 4>}, {pipeline_mode = #tpu.pipeline_mode<synchronous>, transform_indices = @transform_1, window_bounds = array<i64: 16, 32>}, {pipeline_mode = #tpu.pipeline_mode<synchronous>, transform_indices = @transform_2, window_bounds = array<i64: 16, 32>}, {pipeline_mode = #tpu.pipeline_mode<synchronous>, transform_indices = @transform_3, window_bounds = array<i64: 16, 32>}, {pipeline_mode = #tpu.pipeline_mode<synchronous>, transform_indices = @transform_4, window_bounds = array<i64: 16, 8>}, {pipeline_mode = #tpu.pipeline_mode<synchronous>, transform_indices = @transform_5, window_bounds = array<i64: 8, 32>}, {pipeline_mode = #tpu.pipeline_mode<synchronous>, transform_indices = @transform_6, window_bounds = array<i64: 1, 32>}, {transform_indices = @transform_7, window_bounds = array<i64: 8, 32>}]} {
    %c0 = arith.constant 0 : index
    %c0_0 = arith.constant 0 : index
    %0 = vector.load %arg1[%c0, %c0_0] : memref<8x4xi32, #tpu.memory_space<vmem>>, vector<8x1xi32>
    %1 = tpu.iota {dimensions = array<i32: 1>} : vector<8x16xi32>
    %2 = vector.broadcast %0 : vector<8x1xi32> to vector<8x16xi32>
    %3 = arith.cmpi eq, %1, %2 : vector<8x16xi32>
    %4 = arith.extui %3 : vector<8x16xi1> to vector<8x16xi32>
    %5 = arith.sitofp %4 : vector<8x16xi32> to vector<8x16xf32>
    %c0_1 = arith.constant 0 : index
    %c0_2 = arith.constant 0 : index
    %6 = vector.load %arg2[%c0_1, %c0_2] : memref<16x32xf32, #tpu.memory_space<vmem>>, vector<16x32xf32>
    %cst = arith.constant dense<0.000000e+00> : vector<8x32xf32>
    %7 = tpu.matmul %5, %6, %cst {dimension_numbers = #tpu.dot_dimension_numbers<[1], [0], [0], [1], [0, 0, 1, 1], [], []>} : vector<8x16xf32>, vector<16x32xf32>, vector<8x32xf32> -> vector<8x32xf32>
    %c0_3 = arith.constant 0 : index
    %c1 = arith.constant 1 : index
    %8 = vector.load %arg1[%c0_3, %c1] : memref<8x4xi32, #tpu.memory_space<vmem>>, vector<8x1xi32>
    %9 = tpu.iota {dimensions = array<i32: 1>} : vector<8x16xi32>
    %10 = vector.broadcast %8 : vector<8x1xi32> to vector<8x16xi32>
    %11 = arith.cmpi eq, %9, %10 : vector<8x16xi32>
    %12 = arith.extui %11 : vector<8x16xi1> to vector<8x16xi32>
    %13 = arith.sitofp %12 : vector<8x16xi32> to vector<8x16xf32>
    %c0_4 = arith.constant 0 : index
    %c0_5 = arith.constant 0 : index
    %14 = vector.load %arg3[%c0_4, %c0_5] : memref<16x32xf32, #tpu.memory_space<vmem>>, vector<16x32xf32>
    %cst_6 = arith.constant dense<0.000000e+00> : vector<8x32xf32>
    %15 = tpu.matmul %13, %14, %cst_6 {dimension_numbers = #tpu.dot_dimension_numbers<[1], [0], [0], [1], [0, 0, 1, 1], [], []>} : vector<8x16xf32>, vector<16x32xf32>, vector<8x32xf32> -> vector<8x32xf32>
    %16 = arith.addf %7, %15 : vector<8x32xf32>
    %c0_7 = arith.constant 0 : index
    %c2 = arith.constant 2 : index
    %17 = vector.load %arg1[%c0_7, %c2] : memref<8x4xi32, #tpu.memory_space<vmem>>, vector<8x1xi32>
    %18 = tpu.iota {dimensions = array<i32: 1>} : vector<8x16xi32>
    %19 = vector.broadcast %17 : vector<8x1xi32> to vector<8x16xi32>
    %20 = arith.cmpi eq, %18, %19 : vector<8x16xi32>
    %21 = arith.extui %20 : vector<8x16xi1> to vector<8x16xi32>
    %22 = arith.sitofp %21 : vector<8x16xi32> to vector<8x16xf32>
    %c0_8 = arith.constant 0 : index
    %c0_9 = arith.constant 0 : index
    %23 = vector.load %arg4[%c0_8, %c0_9] : memref<16x32xf32, #tpu.memory_space<vmem>>, vector<16x32xf32>
    %cst_10 = arith.constant dense<0.000000e+00> : vector<8x32xf32>
    %24 = tpu.matmul %22, %23, %cst_10 {dimension_numbers = #tpu.dot_dimension_numbers<[1], [0], [0], [1], [0, 0, 1, 1], [], []>} : vector<8x16xf32>, vector<16x32xf32>, vector<8x32xf32> -> vector<8x32xf32>
    %25 = arith.addf %16, %24 : vector<8x32xf32>
    %c0_11 = arith.constant 0 : index
    %c3 = arith.constant 3 : index
    %26 = vector.load %arg1[%c0_11, %c3] : memref<8x4xi32, #tpu.memory_space<vmem>>, vector<8x1xi32>
    %27 = tpu.iota {dimensions = array<i32: 1>} : vector<8x16xi32>
    %28 = vector.broadcast %26 : vector<8x1xi32> to vector<8x16xi32>
    %29 = arith.cmpi eq, %27, %28 : vector<8x16xi32>
    %30 = arith.extui %29 : vector<8x16xi1> to vector<8x16xi32>
    %31 = arith.sitofp %30 : vector<8x16xi32> to vector<8x16xf32>
    %c0_12 = arith.constant 0 : index
    %c0_13 = arith.constant 0 : index
    %32 = vector.load %arg5[%c0_12, %c0_13] : memref<16x8xf32, #tpu.memory_space<vmem>>, vector<16x8xf32>
    %cst_14 = arith.constant dense<0.000000e+00> : vector<8x8xf32>
    %33 = tpu.matmul %31, %32, %cst_14 {dimension_numbers = #tpu.dot_dimension_numbers<[1], [0], [0], [1], [0, 0, 1, 1], [], []>} : vector<8x16xf32>, vector<16x8xf32>, vector<8x8xf32> -> vector<8x8xf32>
    %c0_15 = arith.constant 0 : index
    %c0_16 = arith.constant 0 : index
    %34 = vector.load %arg6[%c0_15, %c0_16] : memref<8x32xf32, #tpu.memory_space<vmem>>, vector<8x32xf32>
    %cst_17 = arith.constant dense<0.000000e+00> : vector<8x32xf32>
    %35 = tpu.matmul %33, %34, %cst_17 {dimension_numbers = #tpu.dot_dimension_numbers<[1], [0], [0], [1], [0, 0, 1, 1], [], []>} : vector<8x8xf32>, vector<8x32xf32>, vector<8x32xf32> -> vector<8x32xf32>
    %36 = arith.addf %25, %35 : vector<8x32xf32>
    %c0_18 = arith.constant 0 : index
    %c0_19 = arith.constant 0 : index
    %37 = vector.load %arg7[%c0_18, %c0_19] : memref<1x32xf32, #tpu.memory_space<vmem>>, vector<1x32xf32>
    %38 = vector.broadcast %37 : vector<1x32xf32> to vector<8x32xf32>
    %39 = arith.addf %36, %38 : vector<8x32xf32>
    %cst_20 = arith.constant 0.000000e+00 : f32
    %40 = vector.broadcast %cst_20 : f32 to vector<8x32xf32>
    %41 = arith.maximumf %39, %40 : vector<8x32xf32>
    %c0_21 = arith.constant 0 : index
    %c0_22 = arith.constant 0 : index
    %42 = vector.load %arg8[%c0_21, %c0_22] : memref<8x32xf32, #tpu.memory_space<vmem>>, vector<8x32xf32>
    tpu.vector_store %arg8[%c0_21, %c0_22], %41 {strides = array<i32>} : memref<8x32xf32, #tpu.memory_space<vmem>>, vector<8x32xf32>,
    return
  }
  func.func @transform_0(%arg0: i32) -> (i32, i32) {
    %c0_i32 = arith.constant 0 : i32
    %c0_i32_0 = arith.constant 0 : i32
    return %arg0, %c0_i32 : i32, i32
  }
  func.func @transform_1(%arg0: i32) -> (i32, i32) {
    %c0_i32 = arith.constant 0 : i32
    %c0_i32_0 = arith.constant 0 : i32
    %c0_i32_1 = arith.constant 0 : i32
    return %c0_i32, %c0_i32_0 : i32, i32
  }
  func.func @transform_2(%arg0: i32) -> (i32, i32) {
    %c0_i32 = arith.constant 0 : i32
    %c0_i32_0 = arith.constant 0 : i32
    %c0_i32_1 = arith.constant 0 : i32
    return %c0_i32, %c0_i32_0 : i32, i32
  }
  func.func @transform_3(%arg0: i32) -> (i32, i32) {
    %c0_i32 = arith.constant 0 : i32
    %c0_i32_0 = arith.constant 0 : i32
    %c0_i32_1 = arith.constant 0 : i32
    return %c0_i32, %c0_i32_0 : i32, i32
  }
  func.func @transform_4(%arg0: i32) -> (i32, i32) {
    %c0_i32 = arith.constant 0 : i32
    %c0_i32_0 = arith.constant 0 : i32
    %c0_i32_1 = arith.constant 0 : i32
    return %c0_i32, %c0_i32_0 : i32, i32
  }
  func.func @transform_5(%arg0: i32) -> (i32, i32) {
    %c0_i32 = arith.constant 0 : i32
    %c0_i32_0 = arith.constant 0 : i32
    %c0_i32_1 = arith.constant 0 : i32
    return %c0_i32, %c0_i32_0 : i32, i32
  }
  func.func @transform_6(%arg0: i32) -> (i32, i32) {
    %c0_i32 = arith.constant 0 : i32
    %c0_i32_0 = arith.constant 0 : i32
    %c0_i32_1 = arith.constant 0 : i32
    return %c0_i32, %c0_i32_0 : i32, i32
  }
  func.func @transform_7(%arg0: i32) -> (i32, i32) {
    %c0_i32 = arith.constant 0 : i32
    %c0_i32_0 = arith.constant 0 : i32
    return %arg0, %c0_i32 : i32, i32
  }
}

</mosaic_0001>

<bundles_post_ra>
// kernel: tpu_custom_call.1
= control target key start
LH: loop header
LB: loop body
LE: loop exit
PB: predicated region body
PF: predicated region fallthrough
CT: control target
= control target key end

     0   :  { %12 = vsyncpa [#allocation3], 0  ;;  %s679_s0 = inlined_call_operand.vmem [shape: s32[8,4], index: 0, kind: input, shape index: {}]   ;;  %s680_s1 = inlined_call_operand.vmem [shape: f32[16,32], index: 1, kind: input, shape index: {}]   ;;  %s681_s2 = inlined_call_operand.vmem [shape: f32[16,32], index: 2, kind: input, shape index: {}]   ;;  %s682_s3 = inlined_call_operand.hbm [shape: f32[16,32], index: 3, kind: input, shape index: {}]   ;;  %s683_s4 = inlined_call_operand.vmem [shape: f32[16,8], index: 4, kind: input, shape index: {}]   ;;  %s684_s5 = inlined_call_operand.vmem [shape: f32[8,32], index: 5, kind: input, shape index: {}]   ;;  %s685_s6 = inlined_call_operand.vmem [shape: f32[1,32], index: 6, kind: input, shape index: {}]   ;;  %s686_s7 = inlined_call_operand.hbm [shape: f32[8,32], index: 7, kind: output, shape index: {}]  }
   0x1   :  { %13 = vsyncpa [#allocation4], 0  ;;  %s587_s24 = smov [#allocation2]  }
   0x2   :  { %s25_s25 = sshll.u32 %s587_s24, 4  ;;  %s26_s25 = int_to_ptr.vmem [resolvable:$true] %s25_s25 }
   0x3   :  { %s551_s26 = scalar_lea.vmem %s26_s25, 256  ;;  %p556_p1 = scmp.lt.s32.totalorder %s26_s25, %s26_s25 }
   0x4   :  { %p552_p0 = scmp.ne.s32.totalorder %s26_s25, %s551_s26  ;;  %p557_p2 = scmp.lt.s32.totalorder %s551_s26, %s551_s26 }
   0x6   :  { %p558_p3 = por %p557_p2, %p556_p1 }
   0x8   :  { %p559_p4 = pnand %p558_p3, %p552_p0 }
   0xa   :  { %562 = shalt.err (!%p559_p4)
}
   0xb   :  { %s588_s27 = smov 128   ;;  %s589_s28 = smov 8  }
   0xc   :  { %31 = dma.hbm_to_vmem [thread:$0]  %s682_s3, 256, %s26_s25, [#allocation3], %s588_s27, %s588_s27, %s589_s28  }
   0xd   :  { %583 = dma.done.wait [#allocation3], 256  }
   0xe   :  { %584 = vsyncadd [#allocation3], 4294967040  ;;  %v590_v0 = vmov 1   ;;  %v591_v1 = vmov 0   ;;  %v592_v2 = vmov 0.0   ;;  %vm593_vm0 = vmmov 0  }
   0xf   :  { %541 = vset.pattern.permute.xlu1 %v590_v0  ;;  %539 = vset.pattern.permute.xlu0 %v591_v1  ;;  %v41_v3 = vld [vmem:[%s679_s0] sm:$0xff]  ;;  %v59_v4 = vld [vmem:[%s681_s2 + $0x8] sm:$0xff]  ;;  %v594_v8 = vmov 2   ;;  %v595_v9 = vmov 3   ;;  %v42_v10 = vlaneseq  ;;  %vm60_vm1 = vcmask 130048  }
  0x10   :  { %496 = vmatprep.subr.mxu0 %v592_v2  ;;  %503 = vmatprep.subr.mxu1 %v592_v2  ;;  %v51_v5 = vld [vmem:[%s680_s1 + $0x8] sm:$0xff]  ;;  %v58_v6 = vld [vmem:[%s681_s2] sm:$0xff]  ;;  %vm371_vm6 = vcmask 64512   ;;  %vm455_vm7 = vcmask 261120  }
  0x11   :  { %500 = vmatprep.mubr.msk.f32.mxu0 %vm593_vm0, %v592_v2  ;;  %507 = vmatprep.mubr.msk.f32.mxu1 %vm593_vm0, %v592_v2  ;;  %v50_v7 = vld [vmem:[%s680_s1] sm:$0xff]  ;;  %v43_v11 = vand.u32 127, %v42_v10  ;;  %v296_v14 = vld [vmem:[%s683_s4 + $0x8] sm:$0xff] }
  0x12   :  { %53 = vperm.xlu1 %541, %v41_v3   ;;  %45 = vperm.xlu0 %539, %v41_v3   ;;  %v214_v15 = vld [vmem:[#allocation2 + $0x8] sm:$0xff]  ;;  %v295_v18 = vld [vmem:[%s683_s4] sm:$0xff] }
  0x13   :  { %497 = vmatpush3.msra.mxu0 %v59_v4  ;;  %504 = vmatpush3.msra.mxu1 %v51_v5  ;;  %v213_v19 = vld [vmem:[#allocation2] sm:$0xff] }
  0x14   :  { %498 = vmatprep.subr.mxu0 %v592_v2  ;;  %505 = vmatprep.subr.mxu1 %v592_v2  ;;  %v370_v24 = vld [vmem:[%s684_s5] sm:$0xff]  ;;  %s596_s5 = smov [#allocation5]  }
  0x15   :  { %499 = vmatpush3.msra.mxu0 %v58_v6  ;;  %506 = vmatpush3.msra.mxu1 %v50_v7  ;;  %v481_v36 = vld [vmem:[%s685_s6] ss:$0 sm:$0xff]  ;;  %s463_s21 = sshll.u32 %s596_s5, 4  ;;  %s464_s21 = int_to_ptr.vmem [resolvable:$true] %s463_s21 }
  0x16   :  { %542 = vset.pattern.permute.xlu1 %v594_v8  ;;  %540 = vset.pattern.permute.xlu0 %v595_v9  ;;  %s563_s22 = scalar_lea.vmem %s464_s21, 128  ;;  %p568_p6 = scmp.lt.s32.totalorder %s464_s21, %s464_s21 }
  0x17   :  { %208 = vperm.xlu1 %542, %v41_v3   ;;  %290 = vperm.xlu0 %540, %v41_v3   ;;  %p564_p5 = scmp.ne.s32.totalorder %s464_s21, %s563_s22  ;;  %p569_p7 = scmp.lt.s32.totalorder %s563_s22, %s563_s22 }
  0x18   :  { %517 = vmatprep.subr.mxu1 %v592_v2  ;;  %510 = vmatprep.subr.mxu0 %v592_v2 }
  0x19   :  { %p570_p8 = por %p569_p7, %p568_p6 }
  0x1b   :  { %p571_p9 = pnand %p570_p8, %p564_p5 }
  0x8d   :  { %v54_v12 = vpop.permute.xlu1 %53  ;;  %v46_v13 = vpop.permute.xlu0 %45 }
  0x8e   :  { %vm55_vm2 = vcmp.eq.s32.totalorder %v43_v11, %v54_v12  ;;  %vm47_vm3 = vcmp.eq.s32.totalorder %v43_v11, %v46_v13 }
  0x8f   :  { %v473_v16 = vsel %vm55_vm2, 1.0, %v592_v2  ;;  %v472_v17 = vsel %vm47_vm3, 1.0, %v592_v2 }
  0x90   :  { %501 = vmatmul.mubr.msk.f32.vlgmr.msra.gmra.mxu0 %vm60_vm1, %v473_v16  ;;  %508 = vmatmul.mubr.msk.f32.vlgmr.msra.gmra.mxu1 %vm60_vm1, %v472_v17 }
  0x91   :  { %518 = vmatpush3.msra.mxu1 %v296_v14  ;;  %511 = vmatpush3.msra.mxu0 %v214_v15 }
  0x92   :  { %v209_v20 = vpop.permute.xlu1 %208  ;;  %519 = vmatprep.subr.mxu1 %v592_v2  ;;  %v291_v21 = vpop.permute.xlu0 %290  ;;  %512 = vmatprep.subr.mxu0 %v592_v2 }
  0x93   :  { %vm210_vm4 = vcmp.eq.s32.totalorder %v43_v11, %v209_v20  ;;  %vm292_vm5 = vcmp.eq.s32.totalorder %v43_v11, %v291_v21  ;;  %520 = vmatpush3.msra.mxu1 %v295_v18  ;;  %513 = vmatpush3.msra.mxu0 %v213_v19 }
  0x94   :  { %v476_v22 = vsel %vm210_vm4, 1.0, %v592_v2  ;;  %v478_v23 = vsel %vm292_vm5, 1.0, %v592_v2  ;;  %514 = vmatprep.mubr.msk.f32.mxu0 %vm593_vm0, %v592_v2  ;;  %521 = vmatprep.mubr.msk.f32.mxu1 %vm593_vm0, %v592_v2 }
  0x95   :  { %515 = vmatmul.mubr.msk.f32.vlgmr.msra.gmra.mxu0 %vm60_vm1, %v476_v22  ;;  %522 = vmatmul.mubr.msk.f32.vlgmr.msra.gmra.mxu1 %vm60_vm1, %v478_v23 }
  0x96   :  { %524 = vmatprep.subr.mxu0 %v592_v2  ;;  %526 = vmatprep.mubr.msk.f32.mxu0 %vm593_vm0, %v592_v2 }
  0x97   :  { %525 = vmatpush3.msra.mxu0 %v370_v24 }
 0x150   :  { %v130_v25 = vpop.f32.mrf.mxu0  ;;  %v203_v26 = vpop.f32.mrf.mxu1 }
 0x151   :  { %v204_v27 = vadd.f32 %v203_v26, %v130_v25 }
 0x152   :  { %v509_v28 = vpop.f32.mrf.mxu1  ;;  %v502_v29 = vpop.f32.mrf.mxu0 }
 0x155   :  { %v284_v30 = vpop.f32.mrf.mxu0  ;;  %v366_v31 = vpop.f32.mrf.mxu1 }
 0x156   :  { %v288_v32 = vadd.f32 %v284_v30, %v204_v27  ;;  %527 = vmatmul.mubr.msk.f32.vlgmr.msra.gmra.mxu0 %vm371_vm6, %v366_v31 }
 0x157   :  { %v523_v33 = vpop.f32.mrf.mxu1  ;;  %v516_v34 = vpop.f32.mrf.mxu0 }
 0x216   :  { %v441_v35 = vpop.f32.mrf.mxu0 }
 0x217   :  { %v445_v37 = vadd.f32 %v441_v35, %v288_v32 }
 0x218   :  { %v528_v38 = vpop.f32.mrf.mxu0 }
 0x219   :  { %v453_v39 = vadd.f32 %v481_v36, %v445_v37 }
 0x21b   :  { %v454_v40 = vmax.f32 %v453_v39, 0.0 }
 0x21d   :  { %456 = vst.msk [vmem:[#allocation5] sm:$0xff] %vm455_vm7, %v454_v40 }
 0x21e   :  { %574 = shalt.err (!%p571_p9)
}
 0x21f   :  { %466 = dma.vmem_to_hbm [thread:$0]  %s464_s21, 128, %s686_s7, [#allocation4]  }
 0x220   :  { %585 = dma.done.wait [#allocation4], 128  }
 0x221   :  { %586 = vsyncadd [#allocation4], 4294967168 }
 0x222   :  { %470 = vsyncpa [#allocation3], 1 }
 0x223   :  { %471 = vsyncpa [#allocation4], 1 }

</bundles_post_ra>
